<compile_context>
chip_gen: v7x
topology: tpu7x:2x2x1
jax: 0.10.0
libtpu: 0.0.40
codegen_flags: <defaults>
</compile_context>

<pallas_src>
import functools

import jax
import jax.numpy as jnp
from jax.experimental import pallas as pl
from jax.experimental.pallas import tpu as pltpu


def _graph_aggr_sum_kernel(z_ref, emb_ref, out_ref, *, heads, final_act):
    # z_ref:   (TB, O)    per-sample latents for this batch tile
    # emb_ref: (1,  H*O)  pooled-graph embedding after the Linear (+MLP act)
    # out_ref: (TB, H*O)  lane-dense flat output (reshaped/transposed outside)
    z = z_ref[...]
    emb = emb_ref[...]
    # out[b, h*O + o] = z[b, o] + emb[0, h*O + o]  -- one vectorized add,
    # no per-head Python loop, no masked partial stores.
    s = jnp.tile(z, (1, heads)) + emb
    # Module-level final activation: elementwise cases are layout/transpose
    # invariant, so they fuse cleanly before the store.  softmax (a reduction
    # over heads) is applied in the wrapper.
    if final_act == "relu":
        s = jnp.maximum(s, 0.0)
    elif final_act == "sigmoid":
        s = jax.nn.sigmoid(s)
    out_ref[...] = s.astype(out_ref.dtype)


def _choose_tile_b(B, output_size, heads, vmem_budget_bytes=8 << 20):
    """Largest multiple-of-8 batch tile whose double-buffered in+out blocks
    stay within ~8 MiB, safe under the scoped-VMEM default on v5e/v6e/v7x."""
    bytes_per_row = 4 * output_size * (1 + heads)      # f32: z row + out row
    tb = vmem_budget_bytes // (2 * bytes_per_row)      # x2 for double buffering
    tb = max(8, min(int(tb), 2048))
    tb = (tb // 8) * 8
    b_padded = ((B + 7) // 8) * 8
    return min(tb, b_padded)


def graph_aggr_sum(z, x, w, b, *, heads, final_act=None):
    """Pallas implementation of GraphAggrSUM.forward(z, x).

    z: (B, output_size) float32
    x: (1, input_size)  float32
    w: (input_size, heads*output_size) float32   (Linear weight, transposed)
    b: (heads*output_size,) float32              (Linear bias)
    returns: (B, output_size, heads) float32     (PyTorch layout)
    """
    B, output_size = z.shape
    input_size = x.shape[-1]
    ho = heads * output_size
    assert w.shape == (input_size, ho)

    # --- hoisted tiny Linear of MLP([input_size, heads*output_size]) ---
    emb = x.reshape(1, input_size) @ w + b.reshape(1, ho)          # (1, H*O)
    # MLP-level final activation (applied again at module level below, which
    # mirrors the original module's double application for relu/sigmoid).
    if final_act == "relu":
        emb = jnp.maximum(emb, 0.0)
    elif final_act == "sigmoid":
        emb = jax.nn.sigmoid(emb)
    # TODO(synk): the MLP's own final_act == "softmax" (over the flat
    # heads*output dim inside the MLP) is not applied; only the module-level
    # softmax over heads is.
    emb = emb.astype(z.dtype)

    tb = _choose_tile_b(B, output_size, heads)
    grid = (pl.cdiv(B, tb),)

    kernel = functools.partial(_graph_aggr_sum_kernel,
                               heads=heads, final_act=final_act)

    out_flat = pl.pallas_call(
        kernel,
        out_shape=jax.ShapeDtypeStruct((B, ho), z.dtype),
        grid_spec=pltpu.PrefetchScalarGridSpec(
            num_scalar_prefetch=0,
            grid=grid,
            in_specs=[
                pl.BlockSpec((tb, output_size), lambda i: (i, 0)),  # z tile
                pl.BlockSpec((1, ho), lambda i: (0, 0)),            # emb
            ],
            out_specs=pl.BlockSpec((tb, ho), lambda i: (i, 0)),     # flat out
        ),
        compiler_params=pltpu.CompilerParams(
            dimension_semantics=("parallel",)),   # dual-TC sharding on v7x
    )(z, emb)

    out_bho = out_flat.reshape(B, heads, output_size)   # free reinterpretation
    if final_act == "softmax":
        # Module-level Softmax(dim=-1) acts over heads *after* the transpose;
        # equivalently softmax over axis=1 while still in lane-dense layout.
        out_bho = jax.nn.softmax(out_bho, axis=1)
    # Layout glue to match PyTorch's (B, output_size, heads).  Downstream
    # consumers that accept (B, heads, output_size) should use out_bho
    # directly and skip this transpose (full extra HBM round-trip).
    return jnp.transpose(out_bho, (0, 2, 1))


def _reference(z, x, w, b, *, heads, final_act=None):
    """Pure-JAX reference mirroring the PyTorch forward."""
    B = z.shape[0]
    emb = x.reshape(1, -1) @ w + b.reshape(1, -1)               # (1, H*O)
    if final_act == "relu":
        emb = jnp.maximum(emb, 0.0)
    elif final_act == "sigmoid":
        emb = jax.nn.sigmoid(emb)
    xr = jnp.tile(emb, (B, 1)).reshape(B, heads, -1)            # (B, H, O)
    out = jnp.transpose(z[:, None, :] + xr, (0, 2, 1))          # (B, O, H)
    if final_act == "relu":
        out = jnp.maximum(out, 0.0)
    elif final_act == "sigmoid":
        out = jax.nn.sigmoid(out)
    elif final_act == "softmax":
        out = jax.nn.softmax(out, axis=-1)
    return out


if __name__ == "__main__":
    # Small, deterministic example shapes.
    B = 16            # batch of latents z (multiple of 8 -> clean sublane tile)
    heads = 2
    input_size = 32   # graph-embedding feature dim
    output_size = 16  # latent / per-head output dim

    key = jax.random.PRNGKey(0)
    kz, kx, kw, kb = jax.random.split(key, 4)
    z = jax.random.normal(kz, (B, output_size), dtype=jnp.float32)
    x = jax.random.normal(kx, (1, input_size), dtype=jnp.float32)
    # Deterministic "Linear(input_size, heads*output_size)" params.
    w = (jax.random.normal(kw, (input_size, heads * output_size),
                           dtype=jnp.float32)
         / jnp.sqrt(jnp.float32(input_size)))
    b = jax.random.normal(kb, (heads * output_size,),
                          dtype=jnp.float32) * 0.01

    for act in (None, "relu", "sigmoid", "softmax"):
        out = graph_aggr_sum(z, x, w, b, heads=heads, final_act=act)
        out = jax.block_until_ready(out)
        ref = _reference(z, x, w, b, heads=heads, final_act=act)
        assert out.shape == (B, output_size, heads), out.shape
        assert jnp.max(jnp.abs(out - ref)) < 1e-5, f"mismatch vs reference ({act})"

    print("KERNEL_OK")
</pallas_src>

<mosaic_0001>
module attributes {stable_mosaic.version = 11 : i64} {
  func.func @_graph_aggr_sum_kernel(%arg0: i32, %arg1: memref<16x16xf32, #tpu.memory_space<vmem>>, %arg2: memref<1x32xf32, #tpu.memory_space<vmem>>, %arg3: memref<16x32xf32, #tpu.memory_space<vmem>>) attributes {dimension_semantics = [#tpu.dimension_semantics<parallel>], iteration_bounds = array<i64: 1>, scalar_prefetch = 0 : i64, scratch_operands = 0 : i64, tpu.core_type = #tpu.core_type<tc>, window_params = [{transform_indices = @transform_0, window_bounds = array<i64: 16, 16>}, {pipeline_mode = #tpu.pipeline_mode<synchronous>, transform_indices = @transform_1, window_bounds = array<i64: 1, 32>}, {transform_indices = @transform_2, window_bounds = array<i64: 16, 32>}]} {
    %c0 = arith.constant 0 : index
    %c0_0 = arith.constant 0 : index
    %0 = vector.load %arg1[%c0, %c0_0] : memref<16x16xf32, #tpu.memory_space<vmem>>, vector<16x16xf32>
    %c0_1 = arith.constant 0 : index
    %c0_2 = arith.constant 0 : index
    %1 = vector.load %arg2[%c0_1, %c0_2] : memref<1x32xf32, #tpu.memory_space<vmem>>, vector<1x32xf32>
    %2 = tpu.concatenate %0, %0 in 1 : vector<16x16xf32>, vector<16x16xf32> -> vector<16x32xf32>
    %3 = vector.broadcast %1 : vector<1x32xf32> to vector<16x32xf32>
    %4 = arith.addf %2, %3 : vector<16x32xf32>
    %c0_3 = arith.constant 0 : index
    %c0_4 = arith.constant 0 : index
    %5 = vector.load %arg3[%c0_3, %c0_4] : memref<16x32xf32, #tpu.memory_space<vmem>>, vector<16x32xf32>
    tpu.vector_store %arg3[%c0_3, %c0_4], %4 {strides = array<i32>} : memref<16x32xf32, #tpu.memory_space<vmem>>, vector<16x32xf32>,
    return
  }
  func.func @transform_0(%arg0: i32) -> (i32, i32) {
    %c0_i32 = arith.constant 0 : i32
    %c0_i32_0 = arith.constant 0 : i32
    return %arg0, %c0_i32 : i32, i32
  }
  func.func @transform_1(%arg0: i32) -> (i32, i32) {
    %c0_i32 = arith.constant 0 : i32
    %c0_i32_0 = arith.constant 0 : i32
    %c0_i32_1 = arith.constant 0 : i32
    return %c0_i32, %c0_i32_0 : i32, i32
  }
  func.func @transform_2(%arg0: i32) -> (i32, i32) {
    %c0_i32 = arith.constant 0 : i32
    %c0_i32_0 = arith.constant 0 : i32
    return %arg0, %c0_i32 : i32, i32
  }
}

</mosaic_0001>

<bundles_post_ra>
// kernel: tpu_custom_call.1
= control target key start
LH: loop header
LB: loop body
LE: loop exit
PB: predicated region body
PF: predicated region fallthrough
CT: control target
= control target key end

     0   :  { %7 = vsyncpa [#allocation3], 0  ;;  %s175_s0 = inlined_call_operand.hbm [shape: f32[16,16], index: 0, kind: input, shape index: {}]   ;;  %s176_s1 = inlined_call_operand.vmem [shape: f32[1,32], index: 1, kind: input, shape index: {}]   ;;  %s177_s2 = inlined_call_operand.hbm [shape: f32[16,32], index: 2, kind: output, shape index: {}]  }
   0x1   :  { %8 = vsyncpa [#allocation4], 0  ;;  %s122_s9 = smov [#allocation2]   ;;  %s74_s13 = scalar_lea.hbm %s175_s0, 256 }
   0x2   :  { %s14_s10 = sshll.u32 %s122_s9, 4  ;;  %p75_p0 = scmp.ne.s32.totalorder %s175_s0, %s74_s13  ;;  %s15_s10 = int_to_ptr.vmem [resolvable:$true] %s14_s10 }
   0x3   :  { %p78_p1 = scmp.lt.u32.totalorder %s74_s13, %s175_s0 }
   0x5   :  { %p80_p2 = pnand %p78_p1, %p75_p0 }
   0x7   :  { %83 = shalt.err (!%p80_p2)
}
   0x8   :  { %s84_s18 = scalar_lea.vmem %s15_s10, 256  ;;  %p89_p4 = scmp.lt.s32.totalorder %s15_s10, %s15_s10 }
   0x9   :  { %p85_p3 = scmp.ne.s32.totalorder %s15_s10, %s84_s18  ;;  %p90_p5 = scmp.lt.s32.totalorder %s84_s18, %s84_s18 }
   0xb   :  { %p91_p6 = por %p90_p5, %p89_p4 }
   0xd   :  { %p92_p7 = pnand %p91_p6, %p85_p3 }
   0xf   :  { %95 = shalt.err (!%p92_p7)
}
  0x10   :  { %s123_s19 = smov 128   ;;  %s124_s20 = smov 8  }
  0x11   :  { %20 = dma.hbm_to_vmem [thread:$0]  %s175_s0, 256, %s15_s10, [#allocation3], %s123_s19, %s123_s19, %s124_s20  }
  0x12   :  { %118 = dma.done.wait [#allocation3], 256  }
  0x13   :  { %119 = vsyncadd [#allocation3], 4294967040  ;;  %v26_v0 = vld [vmem:[#allocation2] sm:$0xff]  ;;  %s125_s23 = smov 16   ;;  %v27_v1 = vld [vmem:[#allocation2 + $0x8] sm:$0xff]  ;;  %vm37_vm0 = vcmask 130048  }
  0x14   :  { %31 = vrot.lane.b32.xlu0 %v26_v0, %s125_s23  ;;  %v68_v2 = vld [vmem:[%s176_s1] ss:$0 sm:$0xff]  ;;  %vm48_vm1 = vcmask 261120   ;;  %s126_s26 = smov [#allocation5]  }
  0x15   :  { %s56_s27 = sshll.u32 %s126_s26, 4  ;;  %s57_s27 = int_to_ptr.vmem [resolvable:$true] %s56_s27 }
  0x16   :  { %s96_s0 = scalar_lea.vmem %s57_s27, 256  ;;  %p101_p9 = scmp.lt.s32.totalorder %s57_s27, %s57_s27 }
  0x17   :  { %p97_p8 = scmp.ne.s32.totalorder %s57_s27, %s96_s0  ;;  %p102_p10 = scmp.lt.s32.totalorder %s96_s0, %s96_s0 }
  0x18   :  { %33 = vrot.lane.b32.xlu0 %v27_v1, %s125_s23 }
  0x19   :  { %p103_p11 = por %p102_p10, %p101_p9 }
  0x1b   :  { %p104_p12 = pnand %p103_p11, %p97_p8 }
  0x86   :  { %v32_v3 = vpop.permute.xlu0 %31 }
  0x87   :  { %v38_v4 = vsel %vm37_vm0, %v26_v0, %v32_v3 }
  0x88   :  { %v46_v5 = vadd.f32 %v68_v2, %v38_v4 }
  0x8a   :  { %v34_v6 = vpop.permute.xlu0 %33  ;;  %49 = vst.msk [vmem:[#allocation5] sm:$0xff] %vm48_vm1, %v46_v5 }
  0x8b   :  { %v39_v7 = vsel %vm37_vm0, %v27_v1, %v34_v6 }
  0x8c   :  { %v47_v8 = vadd.f32 %v68_v2, %v39_v7 }
  0x8e   :  { %50 = vst.msk [vmem:[#allocation5 + $0x8] sm:$0xff] %vm48_vm1, %v47_v8 }
  0x8f   :  { %107 = shalt.err (!%p104_p12)
}
  0x90   :  { %s108_s29 = scalar_lea.hbm %s177_s2, 256 }
  0x91   :  { %p109_p13 = scmp.ne.s32.totalorder %s177_s2, %s108_s29  ;;  %p112_p0 = scmp.lt.u32.totalorder %s108_s29, %s177_s2 }
  0x93   :  { %p114_p1 = pnand %p112_p0, %p109_p13 }
  0x95   :  { %117 = shalt.err (!%p114_p1)
}
  0x96   :  { %62 = dma.vmem_to_hbm [thread:$0]  %s57_s27, 256, %s177_s2, [#allocation4], %s123_s19, %s123_s19, %s124_s20  }
  0x97   :  { %120 = dma.done.wait [#allocation4], 256  }
  0x98   :  { %121 = vsyncadd [#allocation4], 4294967040 }
  0x99   :  { %66 = vsyncpa [#allocation3], 1 }
  0x9a   :  { %67 = vsyncpa [#allocation4], 1 }

</bundles_post_ra>
